<compile_context>
chip_gen: v5e
topology: v5e:2x2
jax: 0.10.0
libtpu: 0.0.40
codegen_flags: <defaults>
</compile_context>

<pallas_src>
from functools import partial

import numpy as np
import jax
import jax.numpy as jnp
from jax.experimental import pallas as pl
from jax.experimental.pallas import tpu as pltpu

_LANES = 128


# ----------------------------------------------------------------------------
# Plain-JAX glue: Lie-algebra exponential map (matches BARF transforms.lie,
# Taylor expansions so the map is smooth at theta = 0).
# ----------------------------------------------------------------------------
def _skew(w):
    wx, wy, wz = w[0], w[1], w[2]
    z = jnp.zeros((), dtype=w.dtype)
    return jnp.stack([
        jnp.stack([z, -wz, wy]),
        jnp.stack([wz, z, -wx]),
        jnp.stack([-wy, wx, z]),
    ])


def _taylor_A(x, nth=10):  # sin(x)/x
    ans = jnp.zeros_like(x)
    denom = 1.0
    for i in range(nth + 1):
        if i > 0:
            denom *= (2 * i) * (2 * i + 1)
        ans = ans + ((-1) ** i) * x ** (2 * i) / denom
    return ans


def _taylor_B(x, nth=10):  # (1-cos(x))/x^2
    ans = jnp.zeros_like(x)
    denom = 1.0
    for i in range(nth + 1):
        denom *= (2 * i + 1) * (2 * i + 2)
        ans = ans + ((-1) ** i) * x ** (2 * i) / denom
    return ans


def _taylor_C(x, nth=10):  # (x-sin(x))/x^3
    ans = jnp.zeros_like(x)
    denom = 1.0
    for i in range(nth + 1):
        denom *= (2 * i + 2) * (2 * i + 3)
        ans = ans + ((-1) ** i) * x ** (2 * i) / denom
    return ans


def se3_to_SE3(wu):
    """wu: [6] se3 vector -> [3, 4] SE3 matrix."""
    w, u = wu[:3], wu[3:]
    wx = _skew(w)
    theta = jnp.linalg.norm(w)
    I = jnp.eye(3, dtype=wu.dtype)
    A, B, C = _taylor_A(theta), _taylor_B(theta), _taylor_C(theta)
    wx2 = wx @ wx
    R = I + A * wx + B * wx2
    V = I + B * wx + C * wx2
    return jnp.concatenate([R, V @ u[:, None]], axis=-1)  # [3, 4]


# ----------------------------------------------------------------------------
# Reference / small-batch fallback (pure jnp; XLA fuses it with neighbours).
# ----------------------------------------------------------------------------
def compose_pair_jnp(c2l, l2w):
    R_a, t_a = c2l[:, :3], c2l[:, 3]
    R_b, t_b = l2w[..., :3], l2w[..., 3]
    R_new = R_b @ R_a
    t_new = jnp.einsum("...ij,j->...i", R_b, t_a) + t_b
    return jnp.concatenate([R_new, t_new[..., None]], axis=-1)


_compose_pair_jnp_jit = jax.jit(compose_pair_jnp)


# ----------------------------------------------------------------------------
# Pallas kernel: natural-layout pose composition via lane rolls.
#
#   coef_ref : [8, 128]          coefficient table, row (s+3) holds C_s
#   x_ref    : [R, 128]          flat l2w elements, native dtype
#   o_ref    : [R, 128]          flat output elements, native dtype
#
#   out[p] = sum_{s=-3..+2} C_s[p] * x[p + s]
#     x[p - s] (s>0)  ->  pltpu.roll(x, +s)        (jnp.roll semantics)
#     x[p + s] (s>0)  ->  pltpu.roll(x, 128 - s)
# ----------------------------------------------------------------------------
def _compose_kernel(coef_ref, x_ref, o_ref):
    x = x_ref[...].astype(jnp.float32)                       # [R, 128]
    acc = coef_ref[3:4, :] * x                                # s = 0 term
    for s in (1, 2, 3):                                       # s' = -s
        acc = acc + coef_ref[3 - s:4 - s, :] * pltpu.roll(x, s, axis=1)
    for s in (1, 2):                                          # s' = +s
        acc = acc + coef_ref[3 + s:4 + s, :] * pltpu.roll(x, _LANES - s, axis=1)
    o_ref[...] = acc.astype(o_ref.dtype)                      # one full-block store


def _coef_table(c2l):
    """[8, 128] f32 table: row (s+3) is C_s[p] = M[(p%4)+s, p%4] (0 if invalid)."""
    c2l = c2l.astype(jnp.float32)
    M = jnp.concatenate(
        [c2l, jnp.array([[0.0, 0.0, 0.0, 1.0]], jnp.float32)], axis=0)   # [4, 4]
    j = jnp.arange(_LANES, dtype=jnp.int32) % 4                          # [128]
    s = jnp.arange(-3, 4, dtype=jnp.int32)[:, None]                      # [7, 1]
    k = j[None, :] + s                                                   # [7, 128]
    valid = (k >= 0) & (k <= 3)
    coef = jnp.where(valid,
                     M[jnp.clip(k, 0, 3), jnp.broadcast_to(j, k.shape)],
                     0.0)
    return jnp.concatenate([coef, jnp.zeros((1, _LANES), jnp.float32)], axis=0)


def _round_up(x, m):
    return ((x + m - 1) // m) * m


def _choose_block_rows(n_rows, max_block_rows):
    """Pick the sublane block: >=4 grid steps when possible (v7x dual-TC),
    blocks >= 512 rows (HBM roofline), capped for v5e's 16 MiB scoped VMEM."""
    max_block_rows = max(16, (max_block_rows // 16) * 16)
    if n_rows <= 1024:
        return n_rows                      # single full-dim block
    target = _round_up(-(-n_rows // 4), 16)
    return max(512, min(max_block_rows, target))


@partial(jax.jit, static_argnames=("max_block_rows",))
def compose_pair_pallas(c2l, l2w, *, max_block_rows=4096):
    """compose_pair(pose_a=c2l [3,4], pose_b=l2w [...,3,4]) -> [...,3,4]."""
    batch_shape = l2w.shape[:-2]
    out_dtype = l2w.dtype
    B = int(np.prod(batch_shape)) if batch_shape else 1
    total = B * 12                                         # flat element count

    # Natural flat layout: row-major reshape (bitcast, no copy). Only a tail
    # pad (<=127 elements) is added when 12*B is not a multiple of 128.
    flat = l2w.reshape(total)
    n_rows = -(-total // _LANES)
    pad = n_rows * _LANES - total
    if pad:
        flat = jnp.pad(flat, (0, pad))
    x2d = flat.reshape(n_rows, _LANES)

    coef = _coef_table(c2l)                                # [8, 128] f32

    block_rows = _choose_block_rows(n_rows, max_block_rows)
    grid = (pl.cdiv(n_rows, block_rows),)

    itemsize = jnp.dtype(out_dtype).itemsize
    cost = pl.CostEstimate(
        flops=11 * total,                                  # 6 mul + 5 add / elem
        transcendentals=0,
        bytes_accessed=2 * n_rows * _LANES * itemsize + 8 * _LANES * 4)

    out2d = pl.pallas_call(
        _compose_kernel,
        out_shape=jax.ShapeDtypeStruct((n_rows, _LANES), out_dtype),
        grid=grid,
        in_specs=[
            # Constant block index -> coefficient table fetched once, resident.
            pl.BlockSpec((8, _LANES), lambda i: (0, 0)),
            pl.BlockSpec((block_rows, _LANES), lambda i: (i, 0)),
        ],
        out_specs=pl.BlockSpec((block_rows, _LANES), lambda i: (i, 0)),
        compiler_params=pltpu.CompilerParams(
            dimension_semantics=("parallel",),             # v7x: shard across TCs
        ),
        cost_estimate=cost,
    )(coef, x2d)

    out_flat = out2d.reshape(n_rows * _LANES)
    if pad:
        out_flat = out_flat[:total]
    return out_flat.reshape(*batch_shape, 3, 4)


def compose_pair(c2l, l2w, *, min_pallas_bytes=4 * 1024 * 1024):
    """Size-gated dispatch: below ~a few MiB the fused jnp einsum wins over a
    short-grid pallas_call (fixed overhead + possible tail-pad copy)."""
    if l2w.size * jnp.dtype(l2w.dtype).itemsize < min_pallas_bytes:
        return _compose_pair_jnp_jit(c2l, l2w)
    return compose_pair_pallas(c2l, l2w)


# ----------------------------------------------------------------------------
# Pose module equivalent
# ----------------------------------------------------------------------------
class PosePallas:
    def __init__(self):
        # torch.nn.Embedding(1, 6) initialized to zeros.
        self.ext_weight = jnp.zeros((1, 6), dtype=jnp.float32)
        # Original: init = lie.SE3_to_se3(pose.invert(ang_tra_to_SE3(rot, trans))).
        # TODO(synk): ang_tra_to_SE3 / SE3_to_se3 / opt.extrinsic are not
        # specified; use a deterministic synthetic se3 init constant instead.
        self.init = jnp.array([0.02, -0.01, 0.03, 0.10, -0.20, 0.15],
                              dtype=jnp.float32)
        # TODO(synk): ref_ext (loaded from data/<scene>/ref_ext.json) is unused
        # in forward(); not reproduced.

    def SE3(self):
        return se3_to_SE3(self.ext_weight[0] + self.init)  # [3, 4]

    def forward(self, l2w):
        c2l = self.SE3()
        return compose_pair(c2l, l2w)


if __name__ == "__main__":
    key = jax.random.PRNGKey(0)
    k1, k2 = jax.random.split(key)

    model = PosePallas()
    c2l = model.SE3()

    def ref(c2l_, l2w_):
        return compose_pair_jnp(c2l_.astype(jnp.float32), l2w_.astype(jnp.float32))

    # Case 1: f32, batch multiple of 32 -> zero-copy reshapes, single grid step.
    B1 = 2048
    se3_1 = 0.3 * jax.random.normal(k1, (B1, 6), dtype=jnp.float32)
    l2w_1 = jax.vmap(se3_to_SE3)(se3_1)                     # [B1, 3, 4]
    out1 = jax.block_until_ready(compose_pair_pallas(c2l, l2w_1))
    assert out1.shape == (B1, 3, 4), out1.shape
    np.testing.assert_allclose(np.asarray(out1), np.asarray(ref(c2l, l2w_1)),
                               rtol=1e-5, atol=1e-5)

    # Case 2: f32, ragged batch -> multi-step grid, partial edge block, tail pad.
    B2 = 11000
    se3_2 = 0.3 * jax.random.normal(k2, (B2, 6), dtype=jnp.float32)
    l2w_2 = jax.vmap(se3_to_SE3)(se3_2)
    out2 = jax.block_until_ready(compose_pair_pallas(c2l, l2w_2))
    np.testing.assert_allclose(np.asarray(out2), np.asarray(ref(c2l, l2w_2)),
                               rtol=1e-5, atol=1e-5)

    # Case 3: bf16 pass-through I/O (native dtype in HBM, f32 math in-kernel).
    l2w_bf16 = l2w_1.astype(jnp.bfloat16)
    out3 = jax.block_until_ready(compose_pair_pallas(c2l, l2w_bf16))
    assert out3.dtype == jnp.bfloat16
    np.testing.assert_allclose(np.asarray(out3.astype(jnp.float32)),
                               np.asarray(ref(c2l, l2w_bf16)),
                               rtol=2e-2, atol=2e-2)

    # Case 4: module forward() on a tiny batch -> fused jnp fallback path.
    out4 = jax.block_until_ready(model.forward(l2w_1[:4]))
    assert out4.shape == (4, 3, 4), out4.shape
    np.testing.assert_allclose(np.asarray(out4), np.asarray(ref(c2l, l2w_1[:4])),
                               rtol=1e-5, atol=1e-5)

    print("KERNEL_OK")
</pallas_src>

<mosaic_0001>
module attributes {stable_mosaic.version = 11 : i64} {
  func.func @_compose_kernel(%arg0: i32, %arg1: memref<8x128xf32, #tpu.memory_space<vmem>>, %arg2: memref<192x128xf32, #tpu.memory_space<vmem>>, %arg3: memref<192x128xf32, #tpu.memory_space<vmem>>) attributes {dimension_semantics = [#tpu.dimension_semantics<parallel>], iteration_bounds = array<i64: 1>, scalar_prefetch = 0 : i64, scratch_operands = 0 : i64, tpu.core_type = #tpu.core_type<tc>, window_params = [{pipeline_mode = #tpu.pipeline_mode<synchronous>, transform_indices = @transform_0, window_bounds = array<i64: 8, 128>}, {transform_indices = @transform_1, window_bounds = array<i64: 192, 128>}, {transform_indices = @transform_2, window_bounds = array<i64: 192, 128>}]} {
    %c0 = arith.constant 0 : index
    %c0_0 = arith.constant 0 : index
    %0 = vector.load %arg2[%c0, %c0_0] : memref<192x128xf32, #tpu.memory_space<vmem>>, vector<192x128xf32>
    %c3 = arith.constant 3 : index
    %c0_1 = arith.constant 0 : index
    %1 = vector.load %arg1[%c3, %c0_1] : memref<8x128xf32, #tpu.memory_space<vmem>>, vector<1x128xf32>
    %2 = vector.broadcast %1 : vector<1x128xf32> to vector<192x128xf32>
    %3 = arith.mulf %2, %0 : vector<192x128xf32>
    %c2 = arith.constant 2 : index
    %c0_2 = arith.constant 0 : index
    %4 = vector.load %arg1[%c2, %c0_2] : memref<8x128xf32, #tpu.memory_space<vmem>>, vector<1x128xf32>
    %c1_i32 = arith.constant 1 : i32
    %5 = tpu.dynamic_rotate %0 by %c1_i32 dim 1 : vector<192x128xf32>, i32 -> vector<192x128xf32>
    %6 = vector.broadcast %4 : vector<1x128xf32> to vector<192x128xf32>
    %7 = arith.mulf %6, %5 : vector<192x128xf32>
    %8 = arith.addf %3, %7 : vector<192x128xf32>
    %c1 = arith.constant 1 : index
    %c0_3 = arith.constant 0 : index
    %9 = vector.load %arg1[%c1, %c0_3] : memref<8x128xf32, #tpu.memory_space<vmem>>, vector<1x128xf32>
    %c2_i32 = arith.constant 2 : i32
    %10 = tpu.dynamic_rotate %0 by %c2_i32 dim 1 : vector<192x128xf32>, i32 -> vector<192x128xf32>
    %11 = vector.broadcast %9 : vector<1x128xf32> to vector<192x128xf32>
    %12 = arith.mulf %11, %10 : vector<192x128xf32>
    %13 = arith.addf %8, %12 : vector<192x128xf32>
    %c0_4 = arith.constant 0 : index
    %c0_5 = arith.constant 0 : index
    %14 = vector.load %arg1[%c0_4, %c0_5] : memref<8x128xf32, #tpu.memory_space<vmem>>, vector<1x128xf32>
    %c3_i32 = arith.constant 3 : i32
    %15 = tpu.dynamic_rotate %0 by %c3_i32 dim 1 : vector<192x128xf32>, i32 -> vector<192x128xf32>
    %16 = vector.broadcast %14 : vector<1x128xf32> to vector<192x128xf32>
    %17 = arith.mulf %16, %15 : vector<192x128xf32>
    %18 = arith.addf %13, %17 : vector<192x128xf32>
    %c4 = arith.constant 4 : index
    %c0_6 = arith.constant 0 : index
    %19 = vector.load %arg1[%c4, %c0_6] : memref<8x128xf32, #tpu.memory_space<vmem>>, vector<1x128xf32>
    %c127_i32 = arith.constant 127 : i32
    %20 = tpu.dynamic_rotate %0 by %c127_i32 dim 1 : vector<192x128xf32>, i32 -> vector<192x128xf32>
    %21 = vector.broadcast %19 : vector<1x128xf32> to vector<192x128xf32>
    %22 = arith.mulf %21, %20 : vector<192x128xf32>
    %23 = arith.addf %18, %22 : vector<192x128xf32>
    %c5 = arith.constant 5 : index
    %c0_7 = arith.constant 0 : index
    %24 = vector.load %arg1[%c5, %c0_7] : memref<8x128xf32, #tpu.memory_space<vmem>>, vector<1x128xf32>
    %c126_i32 = arith.constant 126 : i32
    %25 = tpu.dynamic_rotate %0 by %c126_i32 dim 1 : vector<192x128xf32>, i32 -> vector<192x128xf32>
    %26 = vector.broadcast %24 : vector<1x128xf32> to vector<192x128xf32>
    %27 = arith.mulf %26, %25 : vector<192x128xf32>
    %28 = arith.addf %23, %27 : vector<192x128xf32>
    %c0_8 = arith.constant 0 : index
    %c0_9 = arith.constant 0 : index
    %29 = vector.load %arg3[%c0_8, %c0_9] : memref<192x128xf32, #tpu.memory_space<vmem>>, vector<192x128xf32>
    tpu.vector_store %arg3[%c0_8, %c0_9], %28 {strides = array<i32>} : memref<192x128xf32, #tpu.memory_space<vmem>>, vector<192x128xf32>,
    return
  }
  func.func @transform_0(%arg0: i32) -> (i32, i32) {
    %c0_i32 = arith.constant 0 : i32
    %c0_i32_0 = arith.constant 0 : i32
    %c0_i32_1 = arith.constant 0 : i32
    return %c0_i32, %c0_i32_0 : i32, i32
  }
  func.func @transform_1(%arg0: i32) -> (i32, i32) {
    %c0_i32 = arith.constant 0 : i32
    %c0_i32_0 = arith.constant 0 : i32
    return %arg0, %c0_i32 : i32, i32
  }
  func.func @transform_2(%arg0: i32) -> (i32, i32) {
    %c0_i32 = arith.constant 0 : i32
    %c0_i32_0 = arith.constant 0 : i32
    return %arg0, %c0_i32 : i32, i32
  }
}

</mosaic_0001>

<bundles_post_ra>
// kernel: compose_pair_pallas.1
= control target key start
LH: loop header
LB: loop body
LE: loop exit
PB: predicated region body
PF: predicated region fallthrough
CT: control target
= control target key end

     0   :  { %s590_s15 = smov 1   ;;  %s591_s3 = smov 2   ;;  %s1465_s1 = inlined_call_operand.vmem [shape: f32[192,128], index: 1, kind: input, shape index: {}]   ;;  %s1466_s0 = inlined_call_operand.vmem [shape: f32[8,128], index: 0, kind: input, shape index: {}]   ;;  %s1467_s2 = inlined_call_operand.vmem [shape: f32[192,128], index: 2, kind: output, shape index: {}]  }
   0x1   :  { %v613_v0 = vld [vmem:[%s1465_s1 + $0x20] sm:$0xff]  ;;  %v618_v1 = vld [vmem:[%s1465_s1 + $0x10] sm:$0xff]  ;;  %v634_v3 = vld [vmem:[%s1465_s1 + $0x28] sm:$0xff]  ;;  %s593_s9 = smov 127   ;;  %s594_s12 = smov 126  }
   0x2   :  { %v623_v2 = vld [vmem:[%s1465_s1] sm:$0xff]  ;;  %70 = vrot.lane.b32.xlu2 %v613_v0, %s590_s15  ;;  %66 = vrot.lane.b32.xlu1 %v618_v1, %s590_s15  ;;  %v639_v4 = vld [vmem:[%s1465_s1 + $0x18] sm:$0xff] }
   0x3   :  { %62 = vrot.lane.b32.xlu0 %v623_v2, %s590_s15  ;;  %v644_v5 = vld [vmem:[%s1465_s1 + $0x8] sm:$0xff]  ;;  %v655_v6 = vld [vmem:[%s1465_s1 + $0x40] sm:$0xff]  ;;  %v660_v7 = vld [vmem:[%s1465_s1 + $0x38] sm:$0xff] }
   0x4   :  { %v665_v8 = vld [vmem:[%s1465_s1 + $0x30] sm:$0xff]  ;;  %v676_v9 = vld [vmem:[%s1465_s1 + $0x58] sm:$0xff]  ;;  %v686_v11 = vld [vmem:[%s1465_s1 + $0x48] sm:$0xff] }
   0x5   :  { %v681_v10 = vld [vmem:[%s1465_s1 + $0x50] sm:$0xff]  ;;  %v702_v13 = vld [vmem:[%s1465_s1 + $0x68] sm:$0xff]  ;;  %v707_v14 = vld [vmem:[%s1465_s1 + $0x60] sm:$0xff] }
   0x6   :  { %v697_v12 = vld [vmem:[%s1465_s1 + $0x70] sm:$0xff]  ;;  %v718_v15 = vld [vmem:[%s1465_s1 + $0x88] sm:$0xff]  ;;  %v723_v16 = vld [vmem:[%s1465_s1 + $0x80] sm:$0xff] }
   0x7   :  { %v728_v17 = vld [vmem:[%s1465_s1 + $0x78] sm:$0xff]  ;;  %v739_v18 = vld [vmem:[%s1465_s1 + $0xa0] sm:$0xff]  ;;  %v749_v20 = vld [vmem:[%s1465_s1 + $0x90] sm:$0xff] }
   0x8   :  { %v744_v19 = vld [vmem:[%s1465_s1 + $0x98] sm:$0xff]  ;;  %v765_v22 = vld [vmem:[%s1465_s1 + $0xb0] sm:$0xff]  ;;  %v770_v23 = vld [vmem:[%s1465_s1 + $0xa8] sm:$0xff] }
   0x9   :  { %v760_v21 = vld [vmem:[%s1465_s1 + $0xb8] sm:$0xff]  ;;  %s592_s1 = smov 3   ;;  %v849_v41 = vld [vmem:[%s1466_s0 + $0x3] ss:$0 sm:$0xff]  ;;  %v854_v42 = vld [vmem:[%s1466_s0 + $0x2] ss:$0 sm:$0xff] }
   0xa   :  { %72 = vrot.lane.b32.xlu2 %v634_v3, %s590_s15  ;;  %68 = vrot.lane.b32.xlu1 %v639_v4, %s590_s15  ;;  %v39_v44 = vmul.f32 %v849_v41, %v618_v1  ;;  %v864_v46 = vld [vmem:[%s1466_s0 + $0x1] ss:$0 sm:$0xff]  ;;  %v42_v53 = vmul.f32 %v849_v41, %v634_v3  ;;  %v45_v61 = vmul.f32 %v849_v41, %v655_v6 }
   0xb   :  { %64 = vrot.lane.b32.xlu0 %v644_v5, %s590_s15 }
  0x12   :  { %78 = vrot.lane.b32.xlu2 %v655_v6, %s590_s15  ;;  %76 = vrot.lane.b32.xlu1 %v660_v7, %s590_s15 }
  0x13   :  { %74 = vrot.lane.b32.xlu0 %v665_v8, %s590_s15 }
  0x1a   :  { %84 = vrot.lane.b32.xlu2 %v676_v9, %s590_s15  ;;  %82 = vrot.lane.b32.xlu1 %v681_v10, %s590_s15 }
  0x1b   :  { %80 = vrot.lane.b32.xlu0 %v686_v11, %s590_s15 }
  0x22   :  { %90 = vrot.lane.b32.xlu2 %v697_v12, %s590_s15  ;;  %88 = vrot.lane.b32.xlu1 %v702_v13, %s590_s15 }
  0x23   :  { %86 = vrot.lane.b32.xlu0 %v707_v14, %s590_s15 }
  0x2a   :  { %96 = vrot.lane.b32.xlu2 %v718_v15, %s590_s15  ;;  %94 = vrot.lane.b32.xlu1 %v723_v16, %s590_s15 }
  0x2b   :  { %92 = vrot.lane.b32.xlu0 %v728_v17, %s590_s15 }
  0x32   :  { %102 = vrot.lane.b32.xlu2 %v739_v18, %s590_s15  ;;  %100 = vrot.lane.b32.xlu1 %v744_v19, %s590_s15 }
  0x33   :  { %98 = vrot.lane.b32.xlu0 %v749_v20, %s590_s15 }
  0x3a   :  { %108 = vrot.lane.b32.xlu2 %v760_v21, %s590_s15  ;;  %106 = vrot.lane.b32.xlu1 %v765_v22, %s590_s15 }
  0x3b   :  { %104 = vrot.lane.b32.xlu0 %v770_v23, %s590_s15 }
  0x42   :  { %164 = vrot.lane.b32.xlu2 %v618_v1, %s591_s3  ;;  %162 = vrot.lane.b32.xlu1 %v644_v5, %s591_s3 }
  0x43   :  { %160 = vrot.lane.b32.xlu0 %v623_v2, %s591_s3 }
  0x4a   :  { %170 = vrot.lane.b32.xlu2 %v634_v3, %s591_s3  ;;  %168 = vrot.lane.b32.xlu1 %v613_v0, %s591_s3 }
  0x4b   :  { %166 = vrot.lane.b32.xlu0 %v639_v4, %s591_s3 }
  0x52   :  { %176 = vrot.lane.b32.xlu2 %v655_v6, %s591_s3  ;;  %174 = vrot.lane.b32.xlu1 %v660_v7, %s591_s3 }
  0x53   :  { %172 = vrot.lane.b32.xlu0 %v665_v8, %s591_s3 }
  0x5a   :  { %182 = vrot.lane.b32.xlu2 %v676_v9, %s591_s3  ;;  %180 = vrot.lane.b32.xlu1 %v681_v10, %s591_s3 }
  0x5b   :  { %178 = vrot.lane.b32.xlu0 %v686_v11, %s591_s3 }
  0x5c   :  { %v790_v24 = vpop.permute.xlu2 %70 }
  0x62   :  { %188 = vrot.lane.b32.xlu2 %v697_v12, %s591_s3  ;;  %186 = vrot.lane.b32.xlu1 %v702_v13, %s591_s3 }
  0x63   :  { %184 = vrot.lane.b32.xlu0 %v707_v14, %s591_s3 }
  0x64   :  { %v73_v25 = vpop.permute.xlu2 %72 }
  0x65   :  { %v116_v54 = vmul.f32 %v854_v42, %v73_v25 }
  0x67   :  { %v140_v57 = vadd.f32 %v116_v54, %v42_v53  ;;  %v37_v54 = vmul.f32 %v849_v41, %v623_v2 }
  0x6a   :  { %194 = vrot.lane.b32.xlu2 %v718_v15, %s591_s3  ;;  %192 = vrot.lane.b32.xlu1 %v723_v16, %s591_s3 }
  0x6b   :  { %190 = vrot.lane.b32.xlu0 %v728_v17, %s591_s3 }
  0x6c   :  { %v79_v26 = vpop.permute.xlu2 %78 }
  0x6d   :  { %v119_v62 = vmul.f32 %v854_v42, %v79_v26  ;;  %v48_v26 = vmul.f32 %v849_v41, %v676_v9 }
  0x72   :  { %200 = vrot.lane.b32.xlu2 %v739_v18, %s591_s3  ;;  %198 = vrot.lane.b32.xlu1 %v744_v19, %s591_s3 }
  0x73   :  { %196 = vrot.lane.b32.xlu0 %v749_v20, %s591_s3 }
  0x74   :  { %v801_v27 = vpop.permute.xlu2 %84  ;;  %v67_v28 = vpop.permute.xlu1 %66 }
  0x75   :  { %v803_v29 = vpop.permute.xlu0 %62  ;;  %v113_v45 = vmul.f32 %v854_v42, %v67_v28  ;;  %v143_v28 = vadd.f32 %v119_v62, %v45_v61 }
  0x77   :  { %v137_v49 = vadd.f32 %v113_v45, %v39_v44 }
  0x7a   :  { %206 = vrot.lane.b32.xlu2 %v760_v21, %s591_s3  ;;  %204 = vrot.lane.b32.xlu1 %v765_v22, %s591_s3 }
  0x7b   :  { %202 = vrot.lane.b32.xlu0 %v770_v23, %s591_s3 }
  0x7c   :  { %v808_v30 = vpop.permute.xlu2 %90  ;;  %v810_v31 = vpop.permute.xlu1 %68 }
  0x7d   :  { %v65_v32 = vpop.permute.xlu0 %64 }
  0x7e   :  { %v112_v53 = vmul.f32 %v854_v42, %v65_v32 }
  0x82   :  { %262 = vrot.lane.b32.xlu2 %v618_v1, %s592_s1  ;;  %260 = vrot.lane.b32.xlu1 %v644_v5, %s592_s1 }
  0x83   :  { %258 = vrot.lane.b32.xlu0 %v623_v2, %s592_s1 }
  0x84   :  { %v818_v33 = vpop.permute.xlu2 %96  ;;  %v820_v34 = vpop.permute.xlu1 %76 }
  0x85   :  { %v822_v35 = vpop.permute.xlu0 %74 }
  0x8a   :  { %268 = vrot.lane.b32.xlu2 %v634_v3, %s592_s1  ;;  %266 = vrot.lane.b32.xlu1 %v613_v0, %s592_s1 }
  0x8b   :  { %264 = vrot.lane.b32.xlu0 %v639_v4, %s592_s1 }
  0x8c   :  { %v830_v36 = vpop.permute.xlu2 %102  ;;  %v832_v37 = vpop.permute.xlu1 %82 }
  0x8d   :  { %v834_v38 = vpop.permute.xlu0 %80 }
  0x92   :  { %274 = vrot.lane.b32.xlu2 %v655_v6, %s592_s1  ;;  %272 = vrot.lane.b32.xlu1 %v660_v7, %s592_s1 }
  0x93   :  { %270 = vrot.lane.b32.xlu0 %v665_v8, %s592_s1 }
  0x94   :  { %v842_v39 = vpop.permute.xlu2 %108  ;;  %v844_v40 = vpop.permute.xlu1 %88 }
  0x95   :  { %v856_v43 = vpop.permute.xlu0 %86 }
  0x9a   :  { %280 = vrot.lane.b32.xlu2 %v676_v9, %s592_s1  ;;  %278 = vrot.lane.b32.xlu1 %v681_v10, %s592_s1 }
  0x9b   :  { %276 = vrot.lane.b32.xlu0 %v686_v11, %s592_s1 }
  0x9c   :  { %v165_v47 = vpop.permute.xlu2 %164  ;;  %v872_v48 = vpop.permute.xlu1 %94 }
  0x9d   :  { %v211_v50 = vmul.f32 %v864_v46, %v165_v47  ;;  %v875_v51 = vpop.permute.xlu0 %92 }
  0x9f   :  { %v877_v52 = vadd.f32 %v211_v50, %v137_v49  ;;  %v122_v49 = vmul.f32 %v854_v42, %v801_v27  ;;  %v38_v50 = vmul.f32 %v849_v41, %v644_v5 }
  0xa1   :  { %v136_v61 = vadd.f32 %v112_v53, %v38_v50  ;;  %v125_v50 = vmul.f32 %v854_v42, %v808_v30  ;;  %v40_v53 = vmul.f32 %v849_v41, %v639_v4 }
  0xa2   :  { %286 = vrot.lane.b32.xlu2 %v697_v12, %s592_s1  ;;  %284 = vrot.lane.b32.xlu1 %v702_v13, %s592_s1 }
  0xa3   :  { %282 = vrot.lane.b32.xlu0 %v707_v14, %s592_s1 }
  0xa4   :  { %v171_v55 = vpop.permute.xlu2 %170  ;;  %v888_v56 = vpop.permute.xlu1 %100 }
  0xa5   :  { %v214_v58 = vmul.f32 %v864_v46, %v171_v55  ;;  %v891_v59 = vpop.permute.xlu0 %98  ;;  %v111_v55 = vmul.f32 %v854_v42, %v803_v29 }
  0xa7   :  { %v893_v60 = vadd.f32 %v214_v58, %v140_v57  ;;  %v146_v58 = vadd.f32 %v122_v49, %v48_v26  ;;  %v115_v26 = vmul.f32 %v854_v42, %v790_v24  ;;  %v51_v49 = vmul.f32 %v849_v41, %v697_v12 }
  0xaa   :  { %292 = vrot.lane.b32.xlu2 %v718_v15, %s592_s1  ;;  %290 = vrot.lane.b32.xlu1 %v723_v16, %s592_s1 }
  0xab   :  { %288 = vrot.lane.b32.xlu0 %v728_v17, %s592_s1 }
  0xac   :  { %v177_v63 = vpop.permute.xlu2 %176  ;;  %v904_v25 = vpop.permute.xlu1 %106 }
  0xad   :  { %1468 = vst [vmem:[#allocation2_spill] sm:$0xff] %v904_v25  ;;  %v217_v44 = vmul.f32 %v864_v46, %v177_v63  ;;  %v907_v45 = vpop.permute.xlu0 %104  ;;  %v41_v25 = vmul.f32 %v849_v41, %v613_v0 }
  0xae   :  { %1469 = vst [vmem:[#allocation3_spill] sm:$0xff] %v907_v45 }
  0xaf   :  { %v909_v47 = vadd.f32 %v217_v44, %v143_v28  ;;  %v135_v28 = vadd.f32 %v111_v55, %v37_v54  ;;  %v114_v54 = vmul.f32 %v854_v42, %v810_v31 }
  0xb1   :  { %1470 = vst [vmem:[#allocation4_spill] sm:$0xff] %v909_v47 }
  0xb2   :  { %298 = vrot.lane.b32.xlu2 %v739_v18, %s592_s1  ;;  %296 = vrot.lane.b32.xlu1 %v744_v19, %s592_s1 }
  0xb3   :  { %294 = vrot.lane.b32.xlu0 %v749_v20, %s592_s1 }
  0xb4   :  { %v183_v27 = vpop.permute.xlu2 %182  ;;  %v163_v57 = vpop.permute.xlu1 %162 }
  0xb5   :  { %v220_v32 = vmul.f32 %v864_v46, %v183_v27  ;;  %v210_v62 = vmul.f32 %v864_v46, %v163_v57  ;;  %v161_v63 = vpop.permute.xlu0 %160  ;;  %v139_v27 = vadd.f32 %v115_v26, %v41_v25  ;;  %v149_v57 = vadd.f32 %v125_v50, %v51_v49 }
  0xb6   :  { %v209_v29 = vmul.f32 %v864_v46, %v161_v63  ;;  %v128_v25 = vmul.f32 %v854_v42, %v818_v33  ;;  %v44_v26 = vmul.f32 %v849_v41, %v660_v7  ;;  %v118_v49 = vmul.f32 %v854_v42, %v820_v34 }
  0xb7   :  { %v931_v44 = vadd.f32 %v220_v32, %v146_v58  ;;  %v933_v47 = vadd.f32 %v210_v62, %v136_v61  ;;  %v138_v32 = vadd.f32 %v114_v54, %v40_v53  ;;  %v43_v50 = vmul.f32 %v849_v41, %v665_v8 }
  0xb8   :  { %v935_v45 = vadd.f32 %v209_v29, %v135_v28  ;;  %v54_v29 = vmul.f32 %v849_v41, %v718_v15  ;;  %v117_v53 = vmul.f32 %v854_v42, %v822_v35  ;;  %v142_v34 = vadd.f32 %v118_v49, %v44_v26 }
  0xb9   :  { %v121_v26 = vmul.f32 %v854_v42, %v832_v37  ;;  %v46_v49 = vmul.f32 %v849_v41, %v686_v11 }
  0xba   :  { %304 = vrot.lane.b32.xlu2 %v760_v21, %s592_s1  ;;  %302 = vrot.lane.b32.xlu1 %v765_v22, %s592_s1  ;;  %v141_v35 = vadd.f32 %v117_v53, %v43_v50  ;;  %v120_v50 = vmul.f32 %v854_v42, %v834_v38 }
  0xbb   :  { %300 = vrot.lane.b32.xlu0 %v770_v23, %s592_s1 }
  0xbc   :  { %v189_v24 = vpop.permute.xlu2 %188  ;;  %v169_v55 = vpop.permute.xlu1 %168 }
  0xbd   :  { %v223_v30 = vmul.f32 %v864_v46, %v189_v24  ;;  %v213_v58 = vmul.f32 %v864_v46, %v169_v55  ;;  %v167_v61 = vpop.permute.xlu0 %166  ;;  %v152_v24 = vadd.f32 %v128_v25, %v54_v29  ;;  %v131_v29 = vmul.f32 %v854_v42, %v830_v36 }
  0xbe   :  { %v212_v31 = vmul.f32 %v864_v46, %v167_v61  ;;  %v47_v25 = vmul.f32 %v849_v41, %v681_v10 }
  0xbf   :  { %v958_v62 = vadd.f32 %v223_v30, %v149_v57  ;;  %v960_v63 = vadd.f32 %v213_v58, %v139_v27 }
  0xc0   :  { %v962_v28 = vadd.f32 %v212_v31, %v138_v32  ;;  %v57_v31 = vmul.f32 %v849_v41, %v739_v18 }
  0xc2   :  { %360 = vrot.lane.b32.xlu2 %v618_v1, %s593_s9  ;;  %358 = vrot.lane.b32.xlu1 %v644_v5, %s593_s9 }
  0xc3   :  { %356 = vrot.lane.b32.xlu0 %v623_v2, %s593_s9 }
  0xc4   :  { %v195_v33 = vpop.permute.xlu2 %194  ;;  %v175_v54 = vpop.permute.xlu1 %174 }
  0xc5   :  { %v226_v55 = vmul.f32 %v864_v46, %v195_v33  ;;  %v216_v27 = vmul.f32 %v864_v46, %v175_v54  ;;  %v173_v57 = vpop.permute.xlu0 %172  ;;  %v155_v33 = vadd.f32 %v131_v29, %v57_v31  ;;  %v145_v54 = vadd.f32 %v121_v26, %v47_v25 }
  0xc6   :  { %v215_v30 = vmul.f32 %v864_v46, %v173_v57  ;;  %v134_v31 = vmul.f32 %v854_v42, %v842_v39  ;;  %v50_v29 = vmul.f32 %v849_v41, %v702_v13  ;;  %v124_v25 = vmul.f32 %v854_v42, %v844_v40 }
  0xc7   :  { %v985_v58 = vadd.f32 %v226_v55, %v152_v24  ;;  %v987_v61 = vadd.f32 %v216_v27, %v142_v34  ;;  %v144_v55 = vadd.f32 %v120_v50, %v46_v49  ;;  %v49_v26 = vmul.f32 %v849_v41, %v707_v14 }
  0xc8   :  { %v989_v32 = vadd.f32 %v215_v30, %v141_v35  ;;  %v60_v30 = vmul.f32 %v849_v41, %v760_v21  ;;  %v123_v49 = vmul.f32 %v854_v42, %v856_v43 }
  0xca   :  { %366 = vrot.lane.b32.xlu2 %v634_v3, %s593_s9  ;;  %364 = vrot.lane.b32.xlu1 %v613_v0, %s593_s9 }
  0xcb   :  { %362 = vrot.lane.b32.xlu0 %v639_v4, %s593_s9 }
  0xcc   :  { %v201_v36 = vpop.permute.xlu2 %200  ;;  %v181_v53 = vpop.permute.xlu1 %180 }
  0xcd   :  { %v229_v37 = vmul.f32 %v864_v46, %v201_v36  ;;  %v219_v24 = vmul.f32 %v864_v46, %v181_v53  ;;  %v179_v34 = vpop.permute.xlu0 %178  ;;  %v158_v36 = vadd.f32 %v134_v31, %v60_v30  ;;  %v148_v53 = vadd.f32 %v124_v25, %v50_v29  ;;  %v1052_v31 = vld [vmem:[%s1466_s0] ss:$0 sm:$0xff] }
  0xce   :  { %v218_v38 = vmul.f32 %v864_v46, %v179_v34  ;;  %v127_v30 = vmul.f32 %v854_v42, %v872_v48  ;;  %v52_v29 = vmul.f32 %v849_v41, %v728_v17  ;;  %v126_v25 = vmul.f32 %v854_v42, %v875_v51 }
  0xcf   :  { %v1012_v27 = vadd.f32 %v229_v37, %v155_v33  ;;  %v1014_v57 = vadd.f32 %v219_v24, %v145_v54  ;;  %v147_v37 = vadd.f32 %v123_v49, %v49_v26 }
  0xd0   :  { %v1016_v35 = vadd.f32 %v218_v38, %v144_v55  ;;  %v53_v38 = vmul.f32 %v849_v41, %v723_v16 }
  0xd2   :  { %372 = vrot.lane.b32.xlu2 %v655_v6, %s593_s9  ;;  %370 = vrot.lane.b32.xlu1 %v660_v7, %s593_s9  ;;  %v151_v49 = vadd.f32 %v127_v30, %v53_v38  ;;  %v55_v38 = vmul.f32 %v849_v41, %v749_v20  ;;  %v129_v30 = vmul.f32 %v854_v42, %v891_v59 }
  0xd3   :  { %368 = vrot.lane.b32.xlu0 %v665_v8, %s593_s9 }
  0xd4   :  { %v207_v39 = vpop.permute.xlu2 %206  ;;  %v187_v50 = vpop.permute.xlu1 %186 }
  0xd5   :  { %v232_v40 = vmul.f32 %v864_v46, %v207_v39  ;;  %v222_v33 = vmul.f32 %v864_v46, %v187_v50  ;;  %v185_v54 = vpop.permute.xlu0 %184 }
  0xd6   :  { %v221_v43 = vmul.f32 %v864_v46, %v185_v54 }
  0xd7   :  { %v1039_v24 = vadd.f32 %v232_v40, %v158_v36  ;;  %v1041_v34 = vadd.f32 %v222_v33, %v148_v53  ;;  %v150_v53 = vadd.f32 %v126_v25, %v52_v29 }
  0xd8   :  { %v1043_v55 = vadd.f32 %v221_v43, %v147_v37  ;;  %v56_v37 = vmul.f32 %v849_v41, %v744_v19  ;;  %v130_v43 = vmul.f32 %v854_v42, %v888_v56 }
  0xda   :  { %378 = vrot.lane.b32.xlu2 %v676_v9, %s593_s9  ;;  %376 = vrot.lane.b32.xlu1 %v681_v10, %s593_s9  ;;  %v154_v25 = vadd.f32 %v130_v43, %v56_v37  ;;  %v58_v43 = vmul.f32 %v849_v41, %v770_v23 }
  0xdb   :  { %374 = vrot.lane.b32.xlu0 %v686_v11, %s593_s9 }
  0xdc   :  { %v263_v48 = vpop.permute.xlu2 %262  ;;  %v193_v26 = vpop.permute.xlu1 %192 }
  0xdd   :  { %v309_v39 = vmul.f32 %v1052_v31, %v263_v48  ;;  %v225_v50 = vmul.f32 %v864_v46, %v193_v26  ;;  %v191_v36 = vpop.permute.xlu0 %190 }
  0xde   :  { %v224_v51 = vmul.f32 %v864_v46, %v191_v36 }
  0xdf   :  { %v1068_v40 = vadd.f32 %v309_v39, %v877_v52  ;;  %v1070_v33 = vadd.f32 %v225_v50, %v151_v49  ;;  %v153_v49 = vadd.f32 %v129_v30, %v55_v38 }
  0xe0   :  { %v1072_v54 = vadd.f32 %v224_v51, %v150_v53  ;;  %v59_v53 = vmul.f32 %v849_v41, %v765_v22  ;;  %v1471_v51 = vld [vmem:[#allocation2_spill] sm:$0xff] }
  0xe1   :  { %v133_v37 = vmul.f32 %v854_v42, %v1471_v51 }
  0xe2   :  { %384 = vrot.lane.b32.xlu2 %v697_v12, %s593_s9  ;;  %382 = vrot.lane.b32.xlu1 %v702_v13, %s593_s9 }
  0xe3   :  { %380 = vrot.lane.b32.xlu0 %v707_v14, %s593_s9 }
  0xe4   :  { %v269_v52 = vpop.permute.xlu2 %268  ;;  %v199_v29 = vpop.permute.xlu1 %198 }
  0xe5   :  { %v312_v56 = vmul.f32 %v1052_v31, %v269_v52  ;;  %v228_v48 = vmul.f32 %v864_v46, %v199_v29  ;;  %v197_v26 = vpop.permute.xlu0 %196  ;;  %v1472_v52 = vld [vmem:[#allocation3_spill] sm:$0xff]  ;;  %v157_v29 = vadd.f32 %v133_v37, %v59_v53 }
  0xe6   :  { %v227_v59 = vmul.f32 %v864_v46, %v197_v26  ;;  %v132_v38 = vmul.f32 %v854_v42, %v1472_v52  ;;  %v1473_v26 = vld [vmem:[#allocation4_spill] sm:$0xff] }
  0xe7   :  { %v1092_v39 = vadd.f32 %v312_v56, %v893_v60  ;;  %v1094_v50 = vadd.f32 %v228_v48, %v154_v25 }
  0xe8   :  { %v1096_v36 = vadd.f32 %v227_v59, %v153_v49  ;;  %v156_v48 = vadd.f32 %v132_v38, %v58_v43 }
  0xea   :  { %390 = vrot.lane.b32.xlu2 %v718_v15, %s593_s9  ;;  %388 = vrot.lane.b32.xlu1 %v723_v16, %s593_s9 }
  0xeb   :  { %386 = vrot.lane.b32.xlu0 %v728_v17, %s593_s9 }
  0xec   :  { %v275_v60 = vpop.permute.xlu2 %274  ;;  %v205_v30 = vpop.permute.xlu1 %204 }
  0xed   :  { %v315_v25 = vmul.f32 %v1052_v31, %v275_v60  ;;  %v231_v56 = vmul.f32 %v864_v46, %v205_v30  ;;  %v203_v41 = vpop.permute.xlu0 %202 }
  0xee   :  { %v230_v42 = vmul.f32 %v864_v46, %v203_v41 }
  0xef   :  { %v1116_v49 = vadd.f32 %v315_v25, %v1473_v26  ;;  %v1118_v59 = vadd.f32 %v231_v56, %v157_v29 }
  0xf0   :  { %v1120_v51 = vadd.f32 %v230_v42, %v156_v48 }
  0xf2   :  { %396 = vrot.lane.b32.xlu2 %v739_v18, %s593_s9  ;;  %394 = vrot.lane.b32.xlu1 %v744_v19, %s593_s9 }
  0xf3   :  { %392 = vrot.lane.b32.xlu0 %v749_v20, %s593_s9 }
  0xf4   :  { %v281_v53 = vpop.permute.xlu2 %280  ;;  %v261_v37 = vpop.permute.xlu1 %260 }
  0xf5   :  { %v318_v46 = vmul.f32 %v1052_v31, %v281_v53  ;;  %v308_v43 = vmul.f32 %v1052_v31, %v261_v37  ;;  %v259_v52 = vpop.permute.xlu0 %258 }
  0xf6   :  { %v307_v38 = vmul.f32 %v1052_v31, %v259_v52 }
  0xf7   :  { %v1132_v60 = vadd.f32 %v318_v46, %v931_v44  ;;  %v1135_v30 = vadd.f32 %v308_v43, %v933_v47 }
  0xf8   :  { %v1138_v29 = vadd.f32 %v307_v38, %v935_v45 }
  0xfa   :  { %402 = vrot.lane.b32.xlu2 %v760_v21, %s593_s9  ;;  %400 = vrot.lane.b32.xlu1 %v765_v22, %s593_s9 }
  0xfb   :  { %398 = vrot.lane.b32.xlu0 %v770_v23, %s593_s9 }
  0xfc   :  { %v287_v25 = vpop.permute.xlu2 %286  ;;  %v267_v56 = vpop.permute.xlu1 %266 }
  0xfd   :  { %v321_v44 = vmul.f32 %v1052_v31, %v287_v25  ;;  %v311_v41 = vmul.f32 %v1052_v31, %v267_v56  ;;  %v265_v47 = vpop.permute.xlu0 %264 }
  0xfe   :  { %v310_v48 = vmul.f32 %v1052_v31, %v265_v47 }
  0xff   :  { %v1150_v45 = vadd.f32 %v321_v44, %v958_v62  ;;  %v1153_v42 = vadd.f32 %v311_v41, %v960_v63 }
 0x100   :  { %v1156_v26 = vadd.f32 %v310_v48, %v962_v28 }
 0x102   :  { %458 = vrot.lane.b32.xlu2 %v618_v1, %s594_s12  ;;  %456 = vrot.lane.b32.xlu1 %v644_v5, %s594_s12 }
 0x103   :  { %454 = vrot.lane.b32.xlu0 %v623_v2, %s594_s12 }
 0x104   :  { %v293_v53 = vpop.permute.xlu2 %292  ;;  %v273_v37 = vpop.permute.xlu1 %272 }
 0x105   :  { %v324_v62 = vmul.f32 %v1052_v31, %v293_v53  ;;  %v314_v63 = vmul.f32 %v1052_v31, %v273_v37  ;;  %v271_v46 = vpop.permute.xlu0 %270 }
 0x106   :  { %v313_v28 = vmul.f32 %v1052_v31, %v271_v46 }
 0x107   :  { %v1168_v43 = vadd.f32 %v324_v62, %v985_v58  ;;  %v1171_v1 = vadd.f32 %v314_v63, %v987_v61 }
 0x108   :  { %v1174_v5 = vadd.f32 %v313_v28, %v989_v32 }
 0x10a   :  { %464 = vrot.lane.b32.xlu2 %v634_v3, %s594_s12  ;;  %462 = vrot.lane.b32.xlu1 %v613_v0, %s594_s12 }
 0x10b   :  { %460 = vrot.lane.b32.xlu0 %v639_v4, %s594_s12 }
 0x10c   :  { %v299_v2 = vpop.permute.xlu2 %298  ;;  %v279_v52 = vpop.permute.xlu1 %278 }
 0x10d   :  { %v327_v58 = vmul.f32 %v1052_v31, %v299_v2  ;;  %v317_v38 = vmul.f32 %v1052_v31, %v279_v52  ;;  %v277_v61 = vpop.permute.xlu0 %276 }
 0x10e   :  { %v316_v25 = vmul.f32 %v1052_v31, %v277_v61  ;;  %v1293_v61 = vld [vmem:[%s1466_s0 + $0x5] ss:$0 sm:$0xff] }
 0x10f   :  { %v1186_v32 = vadd.f32 %v327_v58, %v1012_v27  ;;  %v1189_v3 = vadd.f32 %v317_v38, %v1014_v57 }
 0x110   :  { %v1192_v0 = vadd.f32 %v316_v25, %v1016_v35 }
 0x112   :  { %470 = vrot.lane.b32.xlu2 %v655_v6, %s594_s12  ;;  %468 = vrot.lane.b32.xlu1 %v660_v7, %s594_s12 }
 0x113   :  { %466 = vrot.lane.b32.xlu0 %v665_v8, %s594_s12 }
 0x114   :  { %v305_v4 = vpop.permute.xlu2 %304  ;;  %v285_v56 = vpop.permute.xlu1 %284 }
 0x115   :  { %v330_v27 = vmul.f32 %v1052_v31, %v305_v4  ;;  %v320_v44 = vmul.f32 %v1052_v31, %v285_v56  ;;  %v283_v57 = vpop.permute.xlu0 %282 }
 0x116   :  { %v319_v41 = vmul.f32 %v1052_v31, %v283_v57 }
 0x117   :  { %v1204_v35 = vadd.f32 %v330_v27, %v1039_v24  ;;  %v1207_v6 = vadd.f32 %v320_v44, %v1041_v34 }
 0x118   :  { %v1210_v7 = vadd.f32 %v319_v41, %v1043_v55 }
 0x11a   :  { %476 = vrot.lane.b32.xlu2 %v676_v9, %s594_s12  ;;  %474 = vrot.lane.b32.xlu1 %v681_v10, %s594_s12 }
 0x11b   :  { %472 = vrot.lane.b32.xlu0 %v686_v11, %s594_s12 }
 0x11c   :  { %v361_v8 = vpop.permute.xlu2 %360  ;;  %v291_v47 = vpop.permute.xlu1 %290 }
 0x11d   :  { %v323_v24 = vmul.f32 %v1052_v31, %v291_v47  ;;  %v289_v48 = vpop.permute.xlu0 %288 }
 0x11e   :  { %v322_v34 = vmul.f32 %v1052_v31, %v289_v48 }
 0x11f   :  { %v1221_v53 = vadd.f32 %v323_v24, %v1070_v33 }
 0x120   :  { %v1224_v55 = vadd.f32 %v322_v34, %v1072_v54 }
 0x122   :  { %482 = vrot.lane.b32.xlu2 %v697_v12, %s594_s12  ;;  %480 = vrot.lane.b32.xlu1 %v702_v13, %s594_s12 }
 0x123   :  { %478 = vrot.lane.b32.xlu0 %v707_v14, %s594_s12 }
 0x124   :  { %v367_v9 = vpop.permute.xlu2 %366  ;;  %v297_v10 = vpop.permute.xlu1 %296 }
 0x125   :  { %v326_v11 = vmul.f32 %v1052_v31, %v297_v10  ;;  %v295_v37 = vpop.permute.xlu0 %294 }
 0x126   :  { %v325_v33 = vmul.f32 %v1052_v31, %v295_v37 }
 0x127   :  { %v1235_v62 = vadd.f32 %v326_v11, %v1094_v50 }
 0x128   :  { %v1238_v54 = vadd.f32 %v325_v33, %v1096_v36 }
 0x12a   :  { %488 = vrot.lane.b32.xlu2 %v718_v15, %s594_s12  ;;  %486 = vrot.lane.b32.xlu1 %v723_v16, %s594_s12 }
 0x12b   :  { %484 = vrot.lane.b32.xlu0 %v728_v17, %s594_s12 }
 0x12c   :  { %v373_v12 = vpop.permute.xlu2 %372  ;;  %v303_v13 = vpop.permute.xlu1 %302 }
 0x12d   :  { %v329_v14 = vmul.f32 %v1052_v31, %v303_v13  ;;  %v301_v63 = vpop.permute.xlu0 %300 }
 0x12e   :  { %v328_v50 = vmul.f32 %v1052_v31, %v301_v63 }
 0x12f   :  { %v1249_v46 = vadd.f32 %v329_v14, %v1118_v59 }
 0x130   :  { %v1252_v36 = vadd.f32 %v328_v50, %v1120_v51 }
 0x132   :  { %494 = vrot.lane.b32.xlu2 %v739_v18, %s594_s12  ;;  %492 = vrot.lane.b32.xlu1 %v744_v19, %s594_s12 }
 0x133   :  { %490 = vrot.lane.b32.xlu0 %v749_v20, %s594_s12 }
 0x134   :  { %v379_v15 = vpop.permute.xlu2 %378  ;;  %v359_v16 = vpop.permute.xlu1 %358 }
 0x135   :  { %v357_v17 = vpop.permute.xlu0 %356 }
 0x13a   :  { %500 = vrot.lane.b32.xlu2 %v760_v21, %s594_s12  ;;  %498 = vrot.lane.b32.xlu1 %v765_v22, %s594_s12 }
 0x13b   :  { %496 = vrot.lane.b32.xlu0 %v770_v23, %s594_s12  ;;  %v1285_v23 = vld [vmem:[%s1466_s0 + $0x4] ss:$0 sm:$0xff] }
 0x13c   :  { %v385_v31 = vpop.permute.xlu2 %384  ;;  %v365_v18 = vpop.permute.xlu1 %364  ;;  %v407_v38 = vmul.f32 %v1285_v23, %v361_v8  ;;  %v410_v41 = vmul.f32 %v1285_v23, %v367_v9  ;;  %v413_v10 = vmul.f32 %v1285_v23, %v373_v12  ;;  %v416_v14 = vmul.f32 %v1285_v23, %v379_v15 }
 0x13d   :  { %v363_v59 = vpop.permute.xlu0 %362  ;;  %v406_v63 = vmul.f32 %v1285_v23, %v359_v16  ;;  %v405_v12 = vmul.f32 %v1285_v23, %v357_v17  ;;  %v419_v17 = vmul.f32 %v1285_v23, %v385_v31 }
 0x13e   :  { %v431_v56 = vadd.f32 %v407_v38, %v1068_v40  ;;  %v434_v24 = vadd.f32 %v410_v41, %v1092_v39  ;;  %v437_v37 = vadd.f32 %v413_v10, %v1116_v49 }
 0x13f   :  { %v430_v49 = vadd.f32 %v406_v63, %v1135_v30  ;;  %v429_v15 = vadd.f32 %v405_v12, %v1138_v29  ;;  %v443_v31 = vadd.f32 %v419_v17, %v1150_v45 }
 0x144   :  { %v1266_v51 = vpop.permute.xlu2 %390  ;;  %v1268_v19 = vpop.permute.xlu1 %370 }
 0x145   :  { %v1270_v20 = vpop.permute.xlu0 %368  ;;  %v422_v63 = vmul.f32 %v1285_v23, %v1266_v51  ;;  %v412_v45 = vmul.f32 %v1285_v23, %v1268_v19 }
 0x147   :  { %v446_v12 = vadd.f32 %v422_v63, %v1168_v43  ;;  %v436_v19 = vadd.f32 %v412_v45, %v1171_v1 }
 0x14c   :  { %v1272_v28 = vpop.permute.xlu2 %396  ;;  %v1274_v2 = vpop.permute.xlu1 %376 }
 0x14d   :  { %v1276_v21 = vpop.permute.xlu0 %374  ;;  %v415_v43 = vmul.f32 %v1285_v23, %v1274_v2 }
 0x14e   :  { %v414_v1 = vmul.f32 %v1285_v23, %v1276_v21 }
 0x14f   :  { %v439_v2 = vadd.f32 %v415_v43, %v1189_v3 }
 0x150   :  { %v438_v21 = vadd.f32 %v414_v1, %v1192_v0 }
 0x154   :  { %v1278_v52 = vpop.permute.xlu2 %402  ;;  %v1280_v22 = vpop.permute.xlu1 %382 }
 0x155   :  { %v1287_v58 = vpop.permute.xlu0 %380 }
 0x156   :  { %v417_v3 = vmul.f32 %v1285_v23, %v1287_v58 }
 0x158   :  { %v441_v58 = vadd.f32 %v417_v3, %v1210_v7 }
 0x15c   :  { %v459_v25 = vpop.permute.xlu2 %458  ;;  %v1295_v4 = vpop.permute.xlu1 %388 }
 0x15d   :  { %v505_v27 = vmul.f32 %v1293_v61, %v459_v25  ;;  %v1299_v44 = vpop.permute.xlu0 %386  ;;  %v440_v25 = vadd.f32 %v416_v14, %v1132_v60  ;;  %v408_v60 = vmul.f32 %v1285_v23, %v363_v59 }
 0x15f   :  { %v529_v57 = vadd.f32 %v505_v27, %v431_v56  ;;  %v432_v59 = vadd.f32 %v408_v60, %v1156_v26 }
 0x161   :  { %553 = vst [vmem:[%s1467_s2 + $0x10] sm:$0xff] %v529_v57 }
 0x164   :  { %v465_v8 = vpop.permute.xlu2 %464  ;;  %v1305_v47 = vpop.permute.xlu1 %394 }
 0x165   :  { %v508_v48 = vmul.f32 %v1293_v61, %v465_v8  ;;  %v1309_v34 = vpop.permute.xlu0 %392 }
 0x167   :  { %v532_v40 = vadd.f32 %v508_v48, %v434_v24  ;;  %v409_v48 = vmul.f32 %v1285_v23, %v365_v18 }
 0x169   :  { %556 = vst [vmem:[%s1467_s2 + $0x28] sm:$0xff] %v532_v40  ;;  %v433_v18 = vadd.f32 %v409_v48, %v1153_v42  ;;  %v411_v42 = vmul.f32 %v1285_v23, %v1270_v20 }
 0x16b   :  { %v435_v20 = vadd.f32 %v411_v42, %v1174_v5 }
 0x16c   :  { %v471_v9 = vpop.permute.xlu2 %470  ;;  %v1315_v11 = vpop.permute.xlu1 %400 }
 0x16d   :  { %v511_v33 = vmul.f32 %v1293_v61, %v471_v9  ;;  %v1319_v13 = vpop.permute.xlu0 %398 }
 0x16f   :  { %v535_v39 = vadd.f32 %v511_v33, %v437_v37 }
 0x171   :  { %559 = vst [vmem:[%s1467_s2 + $0x40] sm:$0xff] %v535_v39 }
 0x174   :  { %v477_v50 = vpop.permute.xlu2 %476  ;;  %v457_v38 = vpop.permute.xlu1 %456 }
 0x175   :  { %v514_v56 = vmul.f32 %v1293_v61, %v477_v50  ;;  %v504_v27 = vmul.f32 %v1293_v61, %v457_v38  ;;  %v455_v57 = vpop.permute.xlu0 %454 }
 0x176   :  { %v503_v16 = vmul.f32 %v1293_v61, %v455_v57 }
 0x177   :  { %v538_v41 = vadd.f32 %v514_v56, %v440_v25  ;;  %v528_v8 = vadd.f32 %v504_v27, %v430_v49 }
 0x178   :  { %v527_v24 = vadd.f32 %v503_v16, %v429_v15  ;;  %v425_v15 = vmul.f32 %v1285_v23, %v1272_v28 }
 0x179   :  { %562 = vst [vmem:[%s1467_s2 + $0x58] sm:$0xff] %v538_v41 }
 0x17a   :  { %552 = vst [vmem:[%s1467_s2 + $0x8] sm:$0xff] %v528_v8  ;;  %v449_v16 = vadd.f32 %v425_v15, %v1186_v32  ;;  %v418_v32 = vmul.f32 %v1285_v23, %v1280_v22 }
 0x17b   :  { %551 = vst [vmem:[%s1467_s2] sm:$0xff] %v527_v24 }
 0x17c   :  { %v483_v30 = vpop.permute.xlu2 %482  ;;  %v463_v29 = vpop.permute.xlu1 %462  ;;  %v442_v22 = vadd.f32 %v418_v32, %v1207_v6 }
 0x17d   :  { %v517_v40 = vmul.f32 %v1293_v61, %v483_v30  ;;  %v507_v10 = vmul.f32 %v1293_v61, %v463_v29  ;;  %v461_v9 = vpop.permute.xlu0 %460  ;;  %v428_v29 = vmul.f32 %v1285_v23, %v1278_v52 }
 0x17e   :  { %v506_v37 = vmul.f32 %v1293_v61, %v461_v9 }
 0x17f   :  { %v541_v33 = vadd.f32 %v517_v40, %v443_v31  ;;  %v531_v39 = vadd.f32 %v507_v10, %v433_v18  ;;  %v452_v31 = vadd.f32 %v428_v29, %v1204_v35  ;;  %v420_v35 = vmul.f32 %v1285_v23, %v1299_v44 }
 0x180   :  { %v530_v14 = vadd.f32 %v506_v37, %v432_v59 }
 0x181   :  { %565 = vst [vmem:[%s1467_s2 + $0x70] sm:$0xff] %v541_v33  ;;  %v444_v63 = vadd.f32 %v420_v35, %v1224_v55 }
 0x182   :  { %555 = vst [vmem:[%s1467_s2 + $0x20] sm:$0xff] %v531_v39  ;;  %v421_v39 = vmul.f32 %v1285_v23, %v1295_v4 }
 0x183   :  { %554 = vst [vmem:[%s1467_s2 + $0x18] sm:$0xff] %v530_v14 }
 0x184   :  { %v489_v26 = vpop.permute.xlu2 %488  ;;  %v469_v51 = vpop.permute.xlu1 %468  ;;  %v445_v7 = vadd.f32 %v421_v39, %v1221_v53 }
 0x185   :  { %v520_v50 = vmul.f32 %v1293_v61, %v489_v26  ;;  %v510_v38 = vmul.f32 %v1293_v61, %v469_v51  ;;  %v467_v25 = vpop.permute.xlu0 %466  ;;  %v424_v26 = vmul.f32 %v1285_v23, %v1305_v47  ;;  %v423_v51 = vmul.f32 %v1285_v23, %v1309_v34 }
 0x186   :  { %v509_v49 = vmul.f32 %v1293_v61, %v467_v25  ;;  %v426_v34 = vmul.f32 %v1285_v23, %v1319_v13 }
 0x187   :  { %v544_v56 = vadd.f32 %v520_v50, %v446_v12  ;;  %v534_v27 = vadd.f32 %v510_v38, %v436_v19  ;;  %v448_v55 = vadd.f32 %v424_v26, %v1235_v62  ;;  %v447_v50 = vadd.f32 %v423_v51, %v1238_v54 }
 0x188   :  { %v533_v57 = vadd.f32 %v509_v49, %v435_v20  ;;  %v427_v20 = vmul.f32 %v1285_v23, %v1315_v11 }
 0x189   :  { %568 = vst [vmem:[%s1467_s2 + $0x88] sm:$0xff] %v544_v56 }
 0x18a   :  { %558 = vst [vmem:[%s1467_s2 + $0x38] sm:$0xff] %v534_v27  ;;  %v451_v54 = vadd.f32 %v427_v20, %v1249_v46  ;;  %v450_v27 = vadd.f32 %v426_v34, %v1252_v36 }
 0x18b   :  { %557 = vst [vmem:[%s1467_s2 + $0x30] sm:$0xff] %v533_v57 }
 0x18c   :  { %v495_v5 = vpop.permute.xlu2 %494  ;;  %v475_v28 = vpop.permute.xlu1 %474 }
 0x18d   :  { %v523_v41 = vmul.f32 %v1293_v61, %v495_v5  ;;  %v513_v8 = vmul.f32 %v1293_v61, %v475_v28  ;;  %v473_v24 = vpop.permute.xlu0 %472 }
 0x18e   :  { %v512_v17 = vmul.f32 %v1293_v61, %v473_v24 }
 0x18f   :  { %v547_v48 = vadd.f32 %v523_v41, %v449_v16  ;;  %v537_v60 = vadd.f32 %v513_v8, %v439_v2 }
 0x190   :  { %v536_v30 = vadd.f32 %v512_v17, %v438_v21 }
 0x191   :  { %571 = vst [vmem:[%s1467_s2 + $0xa0] sm:$0xff] %v547_v48 }
 0x192   :  { %561 = vst [vmem:[%s1467_s2 + $0x50] sm:$0xff] %v537_v60 }
 0x193   :  { %560 = vst [vmem:[%s1467_s2 + $0x48] sm:$0xff] %v536_v30 }
 0x194   :  { %v501_v0 = vpop.permute.xlu2 %500  ;;  %v481_v52 = vpop.permute.xlu1 %480 }
 0x195   :  { %v526_v18 = vmul.f32 %v1293_v61, %v501_v0  ;;  %v516_v40 = vmul.f32 %v1293_v61, %v481_v52  ;;  %v479_v10 = vpop.permute.xlu0 %478 }
 0x196   :  { %v515_v9 = vmul.f32 %v1293_v61, %v479_v10 }
 0x197   :  { %v550_v59 = vadd.f32 %v526_v18, %v452_v31  ;;  %v540_v37 = vadd.f32 %v516_v40, %v442_v22 }
 0x198   :  { %v539_v33 = vadd.f32 %v515_v9, %v441_v58 }
 0x199   :  { %574 = vst [vmem:[%s1467_s2 + $0xb8] sm:$0xff] %v550_v59 }
 0x19a   :  { %564 = vst [vmem:[%s1467_s2 + $0x68] sm:$0xff] %v540_v37 }
 0x19b   :  { %563 = vst [vmem:[%s1467_s2 + $0x60] sm:$0xff] %v539_v33 }
 0x19c   :  { %v487_v6 = vpop.permute.xlu1 %486 }
 0x19d   :  { %v519_v4 = vmul.f32 %v1293_v61, %v487_v6  ;;  %v485_v14 = vpop.permute.xlu0 %484 }
 0x19e   :  { %v518_v45 = vmul.f32 %v1293_v61, %v485_v14 }
 0x19f   :  { %v543_v42 = vadd.f32 %v519_v4, %v445_v7 }
 0x1a0   :  { %v542_v44 = vadd.f32 %v518_v45, %v444_v63 }
 0x1a1   :  { %567 = vst [vmem:[%s1467_s2 + $0x80] sm:$0xff] %v543_v42 }
 0x1a2   :  { %566 = vst [vmem:[%s1467_s2 + $0x78] sm:$0xff] %v542_v44 }
 0x1a4   :  { %v493_v53 = vpop.permute.xlu1 %492 }
 0x1a5   :  { %v522_v12 = vmul.f32 %v1293_v61, %v493_v53  ;;  %v491_v19 = vpop.permute.xlu0 %490 }
 0x1a6   :  { %v521_v47 = vmul.f32 %v1293_v61, %v491_v19 }
 0x1a7   :  { %v546_v38 = vadd.f32 %v522_v12, %v448_v55 }
 0x1a8   :  { %v545_v25 = vadd.f32 %v521_v47, %v447_v50 }
 0x1a9   :  { %570 = vst [vmem:[%s1467_s2 + $0x98] sm:$0xff] %v546_v38 }
 0x1aa   :  { %569 = vst [vmem:[%s1467_s2 + $0x90] sm:$0xff] %v545_v25 }
 0x1ac   :  { %v499_v62 = vpop.permute.xlu1 %498 }
 0x1ad   :  { %v525_v49 = vmul.f32 %v1293_v61, %v499_v62  ;;  %v497_v56 = vpop.permute.xlu0 %496 }
 0x1ae   :  { %v524_v11 = vmul.f32 %v1293_v61, %v497_v56 }
 0x1af   :  { %v549_v57 = vadd.f32 %v525_v49, %v451_v54 }
 0x1b0   :  { %v548_v15 = vadd.f32 %v524_v11, %v450_v27 }
 0x1b1   :  { %573 = vst [vmem:[%s1467_s2 + $0xb0] sm:$0xff] %v549_v57 }
 0x1b2   :  { %572 = vst [vmem:[%s1467_s2 + $0xa8] sm:$0xff] %v548_v15 }

</bundles_post_ra>
